<compile_context>
chip_gen: v6e
topology: v6e:2x2x1
jax: 0.10.0
libtpu: 0.0.40
codegen_flags: <defaults>
</compile_context>

<pallas_src>
import jax
import jax.numpy as jnp
from jax import lax
from jax.experimental import pallas as pl
from jax.experimental.pallas import tpu as pltpu


def residual_kernel(xpad_ref, a_ref, b_ref, out_ref):
    """Whole-batch residual block on a lane-packed (W*C) layout.

    xpad_ref : (N, H+2, W*C)    f32, rows zero-padded by 1 (top/bottom only)
    a_ref    : (3, W*C, W*Crh)  bf16, banded 3x3-conv weights (one per ky tap)
    b_ref    : (W*Crh, W*C)     bf16, block-diagonal 1x1-conv weights
    out_ref  : (N, H, W*C)      f32
    """
    N, Hp2, WC = xpad_ref.shape
    H = Hp2 - 2

    xp = xpad_ref[...]                       # (N, H+2, W*C), f32
    xr = jnp.maximum(xp, 0.0)                # ReLU (zero padding stays zero)

    # 3x3 conv == 3 banded matmuls (ky taps); kx taps + width zero-padding are
    # encoded inside a_ref, so each dot has K = W*C (lane-aligned, 128 here).
    acc = None
    for ky in range(3):                      # static unroll
        slab = xr[:, ky:ky + H, :].reshape(N * H, WC).astype(jnp.bfloat16)
        d = jnp.dot(slab, a_ref[ky], preferred_element_type=jnp.float32)
        acc = d if acc is None else acc + d  # (N*H, W*Crh), f32

    h = jnp.maximum(acc, 0.0).astype(jnp.bfloat16)        # ReLU, (N*H, W*Crh)

    # 1x1 conv == block-diagonal matmul back to the packed (W*C) layout.
    y = jnp.dot(h, b_ref[...], preferred_element_type=jnp.float32)  # (N*H, W*C)

    x_center = xp[:, 1:1 + H, :].reshape(N * H, WC)       # original x (no ReLU)
    out_ref[...] = (x_center + y).reshape(N, H, WC)       # lane-dense store


def residual_block(x_nchw, w3x3, w1x1):
    """x_nchw: (N, C, H, W); w3x3: (Crh, C, 3, 3) [OIHW]; w1x1: (C, Crh, 1, 1)."""
    N, C, H, W = x_nchw.shape
    Crh = w3x3.shape[0]
    Cout = w1x1.shape[0]
    assert Cout == C, "residual add requires num_hiddens == in_channels"

    # --- layout plumbing (wrapper-side) --------------------------------------
    # NCHW -> NHWC, zero-pad only the H (row) axis by 1; W and C are packed
    # together on the lane axis so the kernel's last dim is W*C (=128 here).
    x_nhwc = jnp.transpose(x_nchw, (0, 2, 3, 1)).astype(jnp.float32)
    xpad = jnp.pad(x_nhwc, ((0, 0), (1, 1), (0, 0), (0, 0))).reshape(
        N, H + 2, W * C)

    # --- weight repacking ----------------------------------------------------
    # a[ky][xin*C + c, xout*Crh + o] = w3[ky, kx, c, o]  iff xin == xout + kx - 1
    # (out-of-range kx taps are simply absent -> width zero-padding for free).
    w3_hwio = jnp.transpose(w3x3, (2, 3, 1, 0)).astype(jnp.float32)  # (3,3,C,Crh)
    a = jnp.stack([
        sum(jnp.kron(jnp.eye(W, k=-(kx - 1), dtype=jnp.float32),
                     w3_hwio[ky, kx]) for kx in range(3))
        for ky in range(3)
    ]).astype(jnp.bfloat16)                                  # (3, W*C, W*Crh)

    # b[x*Crh + r, x*C + o] = w1[o, r]   (block diagonal over width)
    w1_mat = jnp.transpose(w1x1[:, :, 0, 0], (1, 0)).astype(jnp.float32)
    b = jnp.kron(jnp.eye(W, dtype=jnp.float32), w1_mat).astype(jnp.bfloat16)

    out_packed = pl.pallas_call(
        residual_kernel,
        out_shape=jax.ShapeDtypeStruct((N, H, W * C), jnp.float32),
        grid_spec=pltpu.PrefetchScalarGridSpec(
            num_scalar_prefetch=0,
            grid=(1,),  # whole batch folded into the matmul M dim
            in_specs=[
                pl.BlockSpec((N, H + 2, W * C), lambda i: (0, 0, 0)),
                pl.BlockSpec((3, W * C, W * Crh), lambda i: (0, 0, 0)),
                pl.BlockSpec((W * Crh, W * C), lambda i: (0, 0)),
            ],
            out_specs=pl.BlockSpec((N, H, W * C), lambda i: (0, 0, 0)),
        ),
        compiler_params=pltpu.CompilerParams(
            dimension_semantics=("arbitrary",)),
    )(xpad, a, b)

    # packed (N, H, W*C) -> NHWC -> NCHW
    return jnp.transpose(out_packed.reshape(N, H, W, C), (0, 3, 1, 2))


def residual_ref(x_nchw, w3x3, w1x1):
    """Pure-JAX reference (mirrors the PyTorch module, f32 throughout)."""
    h = jax.nn.relu(x_nchw)
    h = lax.conv_general_dilated(h, w3x3, window_strides=(1, 1),
                                 padding=((1, 1), (1, 1)),
                                 dimension_numbers=("NCHW", "OIHW", "NCHW"))
    h = jax.nn.relu(h)
    h = lax.conv_general_dilated(h, w1x1, window_strides=(1, 1),
                                 padding=((0, 0), (0, 0)),
                                 dimension_numbers=("NCHW", "OIHW", "NCHW"))
    return x_nchw + h


if __name__ == "__main__":
    # batch=2, num_hiddens(=in_channels)=8, spatial=16, num_residual_hiddens=4
    # -> W*C = 128 (exactly one lane group).
    N, C, H, W = 2, 8, 16, 16
    Crh = 4

    key = jax.random.PRNGKey(0)
    kx, k3, k1 = jax.random.split(key, 3)
    x = jax.random.normal(kx, (N, C, H, W), dtype=jnp.float32)
    w3x3 = jax.random.normal(k3, (Crh, C, 3, 3), dtype=jnp.float32) * 0.1  # OIHW
    w1x1 = jax.random.normal(k1, (C, Crh, 1, 1), dtype=jnp.float32) * 0.1  # OIHW

    residual_block_jit = jax.jit(residual_block)
    out = residual_block_jit(x, w3x3, w1x1)
    out = jax.block_until_ready(out)

    ref = residual_ref(x, w3x3, w1x1)
    assert out.shape == ref.shape == (N, C, H, W)
    # bf16 MXU inputs (f32 accumulation) -> loosen tolerance vs. the pure-f32 ref.
    assert jnp.allclose(out, ref, atol=2e-2, rtol=2e-2)

    print("KERNEL_OK")
</pallas_src>

<mosaic_0001>
module attributes {stable_mosaic.version = 11 : i64} {
  func.func @residual_kernel(%arg0: i32, %arg1: memref<2x18x128xf32, #tpu.memory_space<vmem>>, %arg2: memref<3x128x64xbf16, #tpu.memory_space<vmem>>, %arg3: memref<64x128xbf16, #tpu.memory_space<vmem>>, %arg4: memref<2x16x128xf32, #tpu.memory_space<vmem>>) attributes {dimension_semantics = [#tpu.dimension_semantics<arbitrary>], iteration_bounds = array<i64: 1>, scalar_prefetch = 0 : i64, scratch_operands = 0 : i64, tpu.core_type = #tpu.core_type<tc>, window_params = [{pipeline_mode = #tpu.pipeline_mode<synchronous>, transform_indices = @transform_0, window_bounds = array<i64: 2, 18, 128>}, {pipeline_mode = #tpu.pipeline_mode<synchronous>, transform_indices = @transform_1, window_bounds = array<i64: 3, 128, 64>}, {pipeline_mode = #tpu.pipeline_mode<synchronous>, transform_indices = @transform_2, window_bounds = array<i64: 64, 128>}, {pipeline_mode = #tpu.pipeline_mode<synchronous>, transform_indices = @transform_3, window_bounds = array<i64: 2, 16, 128>}]} {
    %c0 = arith.constant 0 : index
    %c0_0 = arith.constant 0 : index
    %c0_1 = arith.constant 0 : index
    %0 = vector.load %arg1[%c0, %c0_0, %c0_1] : memref<2x18x128xf32, #tpu.memory_space<vmem>>, vector<2x18x128xf32>
    %cst = arith.constant 0.000000e+00 : f32
    %1 = vector.broadcast %cst : f32 to vector<2x18x128xf32>
    %2 = arith.maximumf %0, %1 : vector<2x18x128xf32>
    %3 = vector.extract_strided_slice %2 {offsets = [0, 0, 0], sizes = [2, 16, 128], strides = [1, 1, 1]} : vector<2x18x128xf32> to vector<2x16x128xf32>
    %4 = vector.shape_cast %3 : vector<2x16x128xf32> to vector<32x128xf32>
    %5 = arith.truncf %4 : vector<32x128xf32> to vector<32x128xbf16>
    %c0_2 = arith.constant 0 : index
    %c0_3 = arith.constant 0 : index
    %c0_4 = arith.constant 0 : index
    %6 = vector.load %arg2[%c0_2, %c0_3, %c0_4] : memref<3x128x64xbf16, #tpu.memory_space<vmem>>, vector<1x128x64xbf16>
    %7 = vector.shape_cast %6 : vector<1x128x64xbf16> to vector<128x64xbf16>
    %cst_5 = arith.constant dense<0.000000e+00> : vector<32x64xf32>
    %8 = tpu.matmul %5, %7, %cst_5 {dimension_numbers = #tpu.dot_dimension_numbers<[1], [0], [0], [1], [0, 0, 1, 1], [], []>} : vector<32x128xbf16>, vector<128x64xbf16>, vector<32x64xf32> -> vector<32x64xf32>
    %9 = vector.extract_strided_slice %2 {offsets = [0, 1, 0], sizes = [2, 16, 128], strides = [1, 1, 1]} : vector<2x18x128xf32> to vector<2x16x128xf32>
    %10 = vector.shape_cast %9 : vector<2x16x128xf32> to vector<32x128xf32>
    %11 = arith.truncf %10 : vector<32x128xf32> to vector<32x128xbf16>
    %c1 = arith.constant 1 : index
    %c0_6 = arith.constant 0 : index
    %c0_7 = arith.constant 0 : index
    %12 = vector.load %arg2[%c1, %c0_6, %c0_7] : memref<3x128x64xbf16, #tpu.memory_space<vmem>>, vector<1x128x64xbf16>
    %13 = vector.shape_cast %12 : vector<1x128x64xbf16> to vector<128x64xbf16>
    %cst_8 = arith.constant dense<0.000000e+00> : vector<32x64xf32>
    %14 = tpu.matmul %11, %13, %cst_8 {dimension_numbers = #tpu.dot_dimension_numbers<[1], [0], [0], [1], [0, 0, 1, 1], [], []>} : vector<32x128xbf16>, vector<128x64xbf16>, vector<32x64xf32> -> vector<32x64xf32>
    %15 = arith.addf %8, %14 : vector<32x64xf32>
    %16 = vector.extract_strided_slice %2 {offsets = [0, 2, 0], sizes = [2, 16, 128], strides = [1, 1, 1]} : vector<2x18x128xf32> to vector<2x16x128xf32>
    %17 = vector.shape_cast %16 : vector<2x16x128xf32> to vector<32x128xf32>
    %18 = arith.truncf %17 : vector<32x128xf32> to vector<32x128xbf16>
    %c2 = arith.constant 2 : index
    %c0_9 = arith.constant 0 : index
    %c0_10 = arith.constant 0 : index
    %19 = vector.load %arg2[%c2, %c0_9, %c0_10] : memref<3x128x64xbf16, #tpu.memory_space<vmem>>, vector<1x128x64xbf16>
    %20 = vector.shape_cast %19 : vector<1x128x64xbf16> to vector<128x64xbf16>
    %cst_11 = arith.constant dense<0.000000e+00> : vector<32x64xf32>
    %21 = tpu.matmul %18, %20, %cst_11 {dimension_numbers = #tpu.dot_dimension_numbers<[1], [0], [0], [1], [0, 0, 1, 1], [], []>} : vector<32x128xbf16>, vector<128x64xbf16>, vector<32x64xf32> -> vector<32x64xf32>
    %22 = arith.addf %15, %21 : vector<32x64xf32>
    %cst_12 = arith.constant 0.000000e+00 : f32
    %23 = vector.broadcast %cst_12 : f32 to vector<32x64xf32>
    %24 = arith.maximumf %22, %23 : vector<32x64xf32>
    %25 = arith.truncf %24 : vector<32x64xf32> to vector<32x64xbf16>
    %c0_13 = arith.constant 0 : index
    %c0_14 = arith.constant 0 : index
    %26 = vector.load %arg3[%c0_13, %c0_14] : memref<64x128xbf16, #tpu.memory_space<vmem>>, vector<64x128xbf16>
    %cst_15 = arith.constant dense<0.000000e+00> : vector<32x128xf32>
    %27 = tpu.matmul %25, %26, %cst_15 {dimension_numbers = #tpu.dot_dimension_numbers<[1], [0], [0], [1], [0, 0, 1, 1], [], []>} : vector<32x64xbf16>, vector<64x128xbf16>, vector<32x128xf32> -> vector<32x128xf32>
    %28 = vector.extract_strided_slice %0 {offsets = [0, 1, 0], sizes = [2, 16, 128], strides = [1, 1, 1]} : vector<2x18x128xf32> to vector<2x16x128xf32>
    %29 = vector.shape_cast %28 : vector<2x16x128xf32> to vector<32x128xf32>
    %30 = arith.addf %29, %27 : vector<32x128xf32>
    %31 = vector.shape_cast %30 : vector<32x128xf32> to vector<2x16x128xf32>
    %c0_16 = arith.constant 0 : index
    %c0_17 = arith.constant 0 : index
    %c0_18 = arith.constant 0 : index
    %32 = vector.load %arg4[%c0_16, %c0_17, %c0_18] : memref<2x16x128xf32, #tpu.memory_space<vmem>>, vector<2x16x128xf32>
    tpu.vector_store %arg4[%c0_16, %c0_17, %c0_18], %31 {strides = array<i32>} : memref<2x16x128xf32, #tpu.memory_space<vmem>>, vector<2x16x128xf32>,
    return
  }
  func.func @transform_0(%arg0: i32) -> (i32, i32, i32) {
    %c0_i32 = arith.constant 0 : i32
    %c0_i32_0 = arith.constant 0 : i32
    %c0_i32_1 = arith.constant 0 : i32
    %c0_i32_2 = arith.constant 0 : i32
    return %c0_i32, %c0_i32_0, %c0_i32_1 : i32, i32, i32
  }
  func.func @transform_1(%arg0: i32) -> (i32, i32, i32) {
    %c0_i32 = arith.constant 0 : i32
    %c0_i32_0 = arith.constant 0 : i32
    %c0_i32_1 = arith.constant 0 : i32
    %c0_i32_2 = arith.constant 0 : i32
    return %c0_i32, %c0_i32_0, %c0_i32_1 : i32, i32, i32
  }
  func.func @transform_2(%arg0: i32) -> (i32, i32) {
    %c0_i32 = arith.constant 0 : i32
    %c0_i32_0 = arith.constant 0 : i32
    %c0_i32_1 = arith.constant 0 : i32
    return %c0_i32, %c0_i32_0 : i32, i32
  }
  func.func @transform_3(%arg0: i32) -> (i32, i32, i32) {
    %c0_i32 = arith.constant 0 : i32
    %c0_i32_0 = arith.constant 0 : i32
    %c0_i32_1 = arith.constant 0 : i32
    %c0_i32_2 = arith.constant 0 : i32
    return %c0_i32, %c0_i32_0, %c0_i32_1 : i32, i32, i32
  }
}

</mosaic_0001>

<bundles_post_ra>
// kernel: residual_block.1
= control target key start
LH: loop header
LB: loop body
LE: loop exit
PB: predicated region body
PF: predicated region fallthrough
CT: control target
= control target key end

     0   :  { %vm51_vm0 = vcmask 1046528   ;;  %vm279_vm1 = vcmask 1045504   ;;  %vm452_vm2 = vcmask 523264   ;;  %s918_s1 = inlined_call_operand.vmem [shape: bf16[3,128,64], index: 1, kind: input, shape index: {}]   ;;  %s919_s0 = inlined_call_operand.vmem [shape: f32[2,18,128], index: 0, kind: input, shape index: {}]   ;;  %s920_s2 = inlined_call_operand.vmem [shape: bf16[64,128], index: 2, kind: input, shape index: {}]   ;;  %s921_s3 = inlined_call_operand.vmem [shape: f32[2,16,128], index: 3, kind: output, shape index: {}]  }
   0x1   :  { %v710_v0 = vld [vmem:[%s918_s1 + $0x78] sm:$0xff]   ;;  %v712_v2 = vld [vmem:[%s918_s1 + $0x70] sm:$0xff]   ;;  %v714_v4 = vld [vmem:[%s918_s1 + $0x68] sm:$0xff]  }
   0x2   :  { %v711_v1 = vld [vmem:[%s918_s1 + $0x38] sm:$0xff]   ;;  %638 = vmatprep.subr.bf16.mxu0 %v710_v0  ;;  %v713_v3 = vld [vmem:[%s918_s1 + $0x30] sm:$0xff]   ;;  %v715_v5 = vld [vmem:[%s918_s1 + $0x28] sm:$0xff]  }
   0x3   :  { %658 = vmatprep.subr.bf16.mxu1 %v711_v1  ;;  %639 = vmatpush3.bf16.msra.mxu0 %v710_v0  ;;  %v716_v6 = vld [vmem:[%s918_s1 + $0x60] sm:$0xff]   ;;  %v718_v8 = vld [vmem:[%s918_s1 + $0x58] sm:$0xff]   ;;  %v720_v10 = vld [vmem:[%s918_s1 + $0x50] sm:$0xff]  }
   0x4   :  { %659 = vmatpush3.bf16.msra.mxu1 %v711_v1  ;;  %640 = vmatprep.subr.bf16.mxu0 %v712_v2  ;;  %v717_v7 = vld [vmem:[%s918_s1 + $0x20] sm:$0xff]   ;;  %v719_v9 = vld [vmem:[%s918_s1 + $0x18] sm:$0xff]   ;;  %v799_v12 = vld [vmem:[%s919_s0 + $0x8] sm:$0xff] }
   0x5   :  { %660 = vmatprep.subr.bf16.mxu1 %v713_v3  ;;  %v794_v11 = vld [vmem:[%s919_s0] sm:$0xff]  ;;  %v804_v13 = vld [vmem:[%s919_s0 + $0x10] sm:$0x3]  ;;  %v22_v16 = vmax.f32 %v799_v12, 0.0  ;;  %v815_v18 = vld [vmem:[%s919_s0 + $0x18] sm:$0xff] }
   0x6   :  { %v721_v14 = vld [vmem:[%s918_s1 + $0x10] sm:$0xff]   ;;  %v21_v15 = vmax.f32 %v794_v11, 0.0  ;;  %v23_v17 = vmax.f32 %v804_v13, 0.0  ;;  %v820_v19 = vld [vmem:[%s919_s0 + $0x20] sm:$0xff]  ;;  %v825_v20 = vld [vmem:[%s919_s0 + $0x28] sm:$0x3] }
   0x7   :  { %641 = vmatpush3.bf16.msra.mxu0 %v712_v2  ;;  %v828_v21 = vmax.f32 %v815_v18, 0.0  ;;  %v831_v22 = vmax.f32 %v820_v19, 0.0  ;;  %v53_v24 = vrot.slane %v22_v16, 1  ;;  %v722_v27 = vld [vmem:[%s918_s1 + $0x48] sm:$0xff]   ;;  %v26_v29 = vmax.f32 %v825_v20, 0.0  ;;  %v724_v32 = vld [vmem:[%s918_s1 + $0x40] sm:$0xff]  }
   0x8   :  { %661 = vmatpush3.bf16.msra.mxu1 %v713_v3  ;;  %642 = vmatprep.subr.bf16.mxu0 %v714_v4  ;;  %v52_v23 = vrot.slane %v21_v15, 1  ;;  %v55_v25 = vrot.slane %v23_v17, 1  ;;  %v27_v26 = vpack.c.bf16 %v22_v16, %v21_v15  ;;  %v723_v28 = vld [vmem:[%s918_s1 + $0x8] sm:$0xff]   ;;  %v725_v37 = vld [vmem:[%s918_s1] sm:$0xff]   ;;  %v280_v38 = vrot.slane %v21_v15, 2  ;;  %v726_v43 = vld [vmem:[%s918_s1 + $0xb8] sm:$0xff]  }
   0x9   :  { %662 = vmatprep.subr.bf16.mxu1 %v715_v5  ;;  %v57_v34 = vrot.slane %v828_v21, 1  ;;  %v58_v35 = vrot.slane %v831_v22, 1  ;;  %v60_v36 = vrot.slane %v26_v29, 1  ;;  %v281_v39 = vrot.slane %v22_v16, 2  ;;  %v727_v48 = vld [vmem:[%s918_s1 + $0xb0] sm:$0xff]   ;;  %v728_v50 = vld [vmem:[%s918_s1 + $0xa8] sm:$0xff]  }
   0xa   :  { %v54_v30 = vsel %vm51_vm0, %v52_v23, %v53_v24  ;;  %v56_v31 = vsel %vm51_vm0, %v53_v24, %v55_v25  ;;  %674 = vmatprep.mubr.bf16.mxu1 %v27_v26  ;;  %v283_v40 = vrot.slane %v23_v17, 2  ;;  %v28_v47 = vpack.c.bf16 %v831_v22, %v828_v21  ;;  %v729_v51 = vld [vmem:[%s918_s1 + $0xa0] sm:$0xff]   ;;  %v730_v52 = vld [vmem:[%s918_s1 + $0x98] sm:$0xff]   ;;  %v731_v53 = vld [vmem:[%s918_s1 + $0x90] sm:$0xff]  }
   0xb   :  { %643 = vmatpush3.bf16.msra.mxu0 %v714_v4  ;;  %v66_v33 = vpack.c.bf16 %v56_v31, %v54_v30  ;;  %v59_v41 = vsel %vm51_vm0, %v57_v34, %v58_v35  ;;  %v61_v42 = vsel %vm51_vm0, %v58_v35, %v60_v36  ;;  %v282_v44 = vsel %vm279_vm1, %v280_v38, %v281_v39  ;;  %v732_v54 = vld [vmem:[%s918_s1 + $0x88] sm:$0xff]   ;;  %v733_v58 = vld [vmem:[%s918_s1 + $0x80] sm:$0xff]   ;;  %v734_v62 = vld [vmem:[%s920_s2 + $0x18] sm:$0xff]  }
   0xc   :  { %663 = vmatpush3.bf16.msra.mxu1 %v715_v5  ;;  %644 = vmatprep.subr.bf16.mxu0 %v716_v6  ;;  %v284_v45 = vsel %vm279_vm1, %v281_v39, %v283_v40  ;;  %v67_v46 = vpack.c.bf16 %v61_v42, %v59_v41  ;;  %v285_v55 = vrot.slane %v828_v21, 2  ;;  %v286_v56 = vrot.slane %v831_v22, 2  ;;  %v735_v63 = vld [vmem:[%s920_s2 + $0x10] sm:$0xff]   ;;  %v736_v0 = vld [vmem:[%s920_s2 + $0x8] sm:$0xff]   ;;  %v737_v1 = vld [vmem:[%s920_s2] sm:$0xff]  }
   0xd   :  { %664 = vmatprep.subr.bf16.mxu1 %v717_v7  ;;  %654 = vmatprep.mubr.bf16.mxu0 %v66_v33  ;;  %v294_v49 = vpack.c.bf16 %v284_v45, %v282_v44  ;;  %v288_v57 = vrot.slane %v26_v29, 2  ;;  %v519_v34 = vrot.slane %v815_v18, 1  ;;  %v520_v35 = vrot.slane %v820_v19, 1 }
   0xe   :  { %v287_v59 = vsel %vm279_vm1, %v285_v55, %v286_v56  ;;  %v514_v36 = vrot.slane %v794_v11, 1  ;;  %v522_v39 = vrot.slane %v825_v20, 1  ;;  %v517_v42 = vrot.slane %v804_v13, 1 }
   0xf   :  { %645 = vmatpush3.bf16.msra.mxu0 %v716_v6  ;;  %v289_v60 = vsel %vm279_vm1, %v286_v56, %v288_v57  ;;  %v521_v38 = vsel %vm51_vm0, %v519_v34, %v520_v35 }
  0x10   :  { %665 = vmatpush3.bf16.msra.mxu1 %v717_v7  ;;  %646 = vmatprep.subr.bf16.mxu0 %v718_v8  ;;  %v295_v61 = vpack.c.bf16 %v289_v60, %v287_v59  ;;  %v523_v45 = vsel %vm51_vm0, %v520_v35, %v522_v39 }
  0x11   :  { %666 = vmatprep.subr.bf16.mxu1 %v719_v9 }
  0x13   :  { %647 = vmatpush3.bf16.msra.mxu0 %v718_v8 }
  0x14   :  { %667 = vmatpush3.bf16.msra.mxu1 %v719_v9  ;;  %648 = vmatprep.subr.bf16.mxu0 %v720_v10 }
  0x15   :  { %668 = vmatprep.subr.bf16.mxu1 %v721_v14 }
  0x17   :  { %649 = vmatpush3.bf16.msra.mxu0 %v720_v10 }
  0x18   :  { %669 = vmatpush3.bf16.msra.mxu1 %v721_v14  ;;  %650 = vmatprep.subr.bf16.mxu0 %v722_v27 }
  0x19   :  { %670 = vmatprep.subr.bf16.mxu1 %v723_v28 }
  0x1b   :  { %651 = vmatpush3.bf16.msra.mxu0 %v722_v27 }
  0x1c   :  { %671 = vmatpush3.bf16.msra.mxu1 %v723_v28  ;;  %652 = vmatprep.subr.bf16.mxu0 %v724_v32 }
  0x1d   :  { %672 = vmatprep.subr.bf16.mxu1 %v725_v37 }
  0x1f   :  { %653 = vmatpush3.bf16.msra.mxu0 %v724_v32 }
  0x20   :  { %673 = vmatpush3.bf16.msra.mxu1 %v725_v37  ;;  %678 = vmatprep.subr.bf16.mxu0 %v726_v43  ;;  %v515_v37 = vrot.slane %v799_v12, 1 }
  0x21   :  { %698 = vmatprep.subr.bf16.mxu1 %v734_v62 }
  0x22   :  { %655 = vmatmul.mubr.bf16.vlgmr.msra.gmra.mxu0 %v67_v46  ;;  %v516_v41 = vsel %vm51_vm0, %v514_v36, %v515_v37  ;;  %v518_v12 = vsel %vm51_vm0, %v515_v37, %v517_v42 }
  0x23   :  { %675 = vmatmul.mubr.bf16.vlgmr.msra.gmra.mxu1 %v28_v47  ;;  %679 = vmatpush3.bf16.msra.mxu0 %v726_v43 }
  0x24   :  { %680 = vmatprep.subr.bf16.mxu0 %v727_v48  ;;  %694 = vmatprep.mubr.bf16.mxu0 %v294_v49 }
  0x25   :  { %699 = vmatpush3.bf16.msra.mxu1 %v734_v62 }
  0x26   :  { %700 = vmatprep.subr.bf16.mxu1 %v735_v63 }
  0x27   :  { %681 = vmatpush3.bf16.msra.mxu0 %v727_v48 }
  0x28   :  { %682 = vmatprep.subr.bf16.mxu0 %v728_v50 }
  0x29   :  { %701 = vmatpush3.bf16.msra.mxu1 %v735_v63 }
  0x2a   :  { %702 = vmatprep.subr.bf16.mxu1 %v736_v0 }
  0x2b   :  { %683 = vmatpush3.bf16.msra.mxu0 %v728_v50 }
  0x2c   :  { %684 = vmatprep.subr.bf16.mxu0 %v729_v51 }
  0x2d   :  { %703 = vmatpush3.bf16.msra.mxu1 %v736_v0 }
  0x2e   :  { %704 = vmatprep.subr.bf16.mxu1 %v737_v1 }
  0x2f   :  { %685 = vmatpush3.bf16.msra.mxu0 %v729_v51 }
  0x30   :  { %686 = vmatprep.subr.bf16.mxu0 %v730_v52 }
  0x31   :  { %705 = vmatpush3.bf16.msra.mxu1 %v737_v1 }
  0x33   :  { %687 = vmatpush3.bf16.msra.mxu0 %v730_v52 }
  0x34   :  { %688 = vmatprep.subr.bf16.mxu0 %v731_v53 }
  0x37   :  { %689 = vmatpush3.bf16.msra.mxu0 %v731_v53 }
  0x38   :  { %690 = vmatprep.subr.bf16.mxu0 %v732_v54 }
  0x3b   :  { %691 = vmatpush3.bf16.msra.mxu0 %v732_v54 }
  0x3c   :  { %692 = vmatprep.subr.bf16.mxu0 %v733_v58 }
  0x3f   :  { %693 = vmatpush3.bf16.msra.mxu0 %v733_v58 }
  0x42   :  { %695 = vmatmul.mubr.bf16.vlgmr.msra.gmra.mxu0 %v295_v61 }
  0xe2   :  { %v656_v2 = vpop.f32.mrf.mxu0 }
  0xe3   :  { %v676_v3 = vpop.f32.mrf.mxu1 }
  0xe4   :  { %v167_v4 = vpop.f32.mrf.mxu0  ;;  %v273_v17 = vadd.f32 %v676_v3, %v656_v2 }
  0xe5   :  { %v264_v5 = vpop.f32.mrf.mxu1 }
  0xe6   :  { %v657_v6 = vpop.f32.mrf.mxu0  ;;  %v265_v15 = vadd.f32 %v264_v5, %v167_v4 }
  0xe7   :  { %v677_v7 = vpop.f32.mrf.mxu1 }
  0xe8   :  { %v170_v8 = vpop.f32.mrf.mxu0  ;;  %v276_v16 = vadd.f32 %v677_v7, %v657_v6 }
  0xe9   :  { %v267_v10 = vpop.f32.mrf.mxu1 }
  0xea   :  { %v268_v22 = vadd.f32 %v267_v10, %v170_v8 }
 0x102   :  { %v696_v9 = vpop.f32.mrf.mxu0 }
 0x103   :  { %v412_v25 = vadd.f32 %v696_v9, %v273_v17 }
 0x104   :  { %v395_v14 = vpop.f32.mrf.mxu0 }
 0x105   :  { %v410_v23 = vadd.f32 %v395_v14, %v265_v15  ;;  %v416_v31 = vmax.f32 %v412_v25, 0.0 }
 0x106   :  { %v697_v21 = vpop.f32.mrf.mxu0 }
 0x107   :  { %v413_v24 = vadd.f32 %v697_v21, %v276_v16  ;;  %v414_v29 = vmax.f32 %v410_v23, 0.0 }
 0x108   :  { %v398_v26 = vpop.f32.mrf.mxu0 }
 0x109   :  { %v411_v27 = vadd.f32 %v398_v26, %v268_v22  ;;  %v417_v28 = vmax.f32 %v413_v24, 0.0 }
 0x10b   :  { %v415_v30 = vmax.f32 %v411_v27, 0.0  ;;  %v419_v33 = vpack.c.bf16 %v417_v28, %v416_v31 }
 0x10d   :  { %v418_v32 = vpack.c.bf16 %v415_v30, %v414_v29 }
 0x10f   :  { %706 = vmatprep.mubr.msk.bf16.mxu1 %vm452_vm2, %v418_v32 }
 0x110   :  { %707 = vmatmul.mubr.msk.bf16.vlgmr.msra.gmra.mxu1 %vm452_vm2, %v419_v33 }
 0x1d0   :  { %v708_v40 = vpop.f32.mrf.mxu1 }
 0x1d1   :  { %v530_v43 = vadd.f32 %v708_v40, %v521_v38 }
 0x1d2   :  { %v493_v44 = vpop.f32.mrf.mxu1 }
 0x1d3   :  { %534 = vst [vmem:[%s921_s3 + $0x10] sm:$0xff] %v530_v43  ;;  %v528_v11 = vadd.f32 %v516_v41, %v493_v44 }
 0x1d4   :  { %v709_v18 = vpop.f32.mrf.mxu1 }
 0x1d5   :  { %532 = vst [vmem:[%s921_s3] sm:$0xff] %v528_v11  ;;  %v531_v19 = vadd.f32 %v709_v18, %v523_v45 }
 0x1d6   :  { %v496_v20 = vpop.f32.mrf.mxu1 }
 0x1d7   :  { %535 = vst [vmem:[%s921_s3 + $0x18] sm:$0xff] %v531_v19  ;;  %v529_v13 = vadd.f32 %v518_v12, %v496_v20 }
 0x1d9   :  { %533 = vst [vmem:[%s921_s3 + $0x8] sm:$0xff] %v529_v13 }

</bundles_post_ra>
